<compile_context>
chip_gen: v6e
topology: v6e:2x2x1
jax: 0.10.0
libtpu: 0.0.40
codegen_flags: <defaults>
</compile_context>

<pallas_src>
import jax
import jax.numpy as jnp
from jax.experimental import pallas as pl
from jax.experimental.pallas import tpu as pltpu


def _round_up(n, m):
    return ((n + m - 1) // m) * m


def _auto_bf16_epilogue():
    """bf16 VPU exists on v6e/v7x; fall back to f32 epilogues on v5e/older."""
    try:
        kind = jax.devices()[0].device_kind.lower()
    except Exception:
        return False
    return not any(v in kind for v in ("v2", "v3", "v4", "v5"))


def _mlp_kernel(x_ref, w1_ref, b1_ref, w2_ref, b2_ref, w3_ref, b3_ref,
                w4_ref, b4_ref, floor_ref, out_ref):
    # ---- Layer 1: Linear(+folded BN) + ReLU on the MXU (K = input_size).
    w1 = w1_ref[...]
    acc = jnp.dot(x_ref[...].astype(w1.dtype), w1,
                  preferred_element_type=jnp.float32)
    h = jnp.maximum(acc.astype(b1_ref.dtype) + b1_ref[...], 0)   # Dropout == identity (eval)

    # ---- Layer 2: Linear(+folded BN) + ReLU (bf16 in / f32 accumulate).
    w2 = w2_ref[...]
    acc = jnp.dot(h.astype(w2.dtype), w2, preferred_element_type=jnp.float32)
    h = jnp.maximum(acc.astype(b2_ref.dtype) + b2_ref[...], 0)   # Dropout == identity (eval)

    # ---- Layer 3: Linear + ReLU (un-padded N = hidden_size // 2).
    w3 = w3_ref[...]
    acc = jnp.dot(h.astype(w3.dtype), w3, preferred_element_type=jnp.float32)
    h = jnp.maximum(acc.astype(b3_ref.dtype) + b3_ref[...], 0)

    # ---- Layer 4 (out dim zero-padded 3 -> 8) + business constraint, fused:
    #      floor = 0.0 for relu columns (0, 2, pads), -inf for passthrough (1).
    w4 = w4_ref[...]
    out = jnp.dot(h.astype(w4.dtype), w4,
                  preferred_element_type=jnp.float32) + b4_ref[...]
    out_ref[...] = jnp.maximum(out, floor_ref[...])


def business_constrained_mlp(x, params, *, tile_b=4096, use_bf16=True,
                             bf16_epilogue=None):
    """Eval-mode forward of BusinessConstrainedMLP. x: (B, input_size) float."""
    x = x.astype(jnp.float32)
    B, in_dim = x.shape
    H = params["w1"].shape[1]                  # hidden_size (128)
    H2 = params["w3"].shape[1]                 # hidden_size // 2 (64)
    out_dim = params["w4"].shape[1]            # 3
    OUTP = 8                                   # narrow lane-padded output

    if bf16_epilogue is None:
        bf16_epilogue = _auto_bf16_epilogue()
    mxu_dtype = jnp.bfloat16 if use_bf16 else jnp.float32
    epi_dtype = jnp.bfloat16 if (use_bf16 and bf16_epilogue) else jnp.float32

    # Fold eval-mode BatchNorm into layer-1/2 weights & biases.
    w1f = (params["w1"] * params["bn1_scale"]).astype(mxu_dtype)
    b1f = (params["b1"] * params["bn1_scale"] + params["bn1_shift"]).astype(epi_dtype)
    w2f = (params["w2"] * params["bn2_scale"]).astype(mxu_dtype)
    b2f = (params["b2"] * params["bn2_scale"] + params["bn2_shift"]).astype(epi_dtype)
    w3f = params["w3"].astype(mxu_dtype)
    b3f = params["b3"].astype(epi_dtype)

    # Layer 4 zero-padded only to 8 output lanes; epilogue stays f32.
    w4p = jnp.zeros((H2, OUTP), jnp.float32).at[:, :out_dim].set(params["w4"]).astype(mxu_dtype)
    b4p = jnp.zeros((1, OUTP), jnp.float32).at[:, :out_dim].set(params["b4"])
    # Per-column relu floor: 0.0 -> relu, -inf -> passthrough (profit, col 1).
    relu_floor = jnp.zeros((1, OUTP), jnp.float32).at[0, 1].set(-jnp.inf)

    # Batch tile: multiple of 8, capped by tile_b; keep >= 2 grid steps when
    # the batch allows it so v7x's two TensorCores both get work.
    B8 = _round_up(B, 8)
    TB = max(8, (min(tile_b, B8) // 8) * 8)
    if TB >= B8 and B8 >= 16:
        TB = _round_up((B8 + 1) // 2, 8)
    B_pad = _round_up(B, TB)

    # Only batch padding (single pass); no lane padding of x.
    x_in = x if B_pad == B else jnp.pad(x, ((0, B_pad - B), (0, 0)))

    grid = (B_pad // TB,)
    const = lambda i: (0, 0)                   # weights stay resident in VMEM
    in_specs = [
        pl.BlockSpec((TB, in_dim), lambda i: (i, 0)),      # x (un-padded lanes)
        pl.BlockSpec((in_dim, H), const),                  # w1 (BN folded)
        pl.BlockSpec((1, H), const),                       # b1
        pl.BlockSpec((H, H), const),                       # w2 (BN folded)
        pl.BlockSpec((1, H), const),                       # b2
        pl.BlockSpec((H, H2), const),                      # w3
        pl.BlockSpec((1, H2), const),                      # b3
        pl.BlockSpec((H2, OUTP), const),                   # w4 (padded 3 -> 8)
        pl.BlockSpec((1, OUTP), const),                    # b4
        pl.BlockSpec((1, OUTP), const),                    # relu floor
    ]
    out_specs = pl.BlockSpec((TB, OUTP), lambda i: (i, 0))

    out_padded = pl.pallas_call(
        _mlp_kernel,
        out_shape=jax.ShapeDtypeStruct((B_pad, OUTP), jnp.float32),
        grid=grid,
        in_specs=in_specs,
        out_specs=out_specs,
        compiler_params=pltpu.CompilerParams(
            dimension_semantics=("parallel",),
            vmem_limit_bytes=48 * 1024 * 1024),
    )(x_in, w1f, b1f, w2f, b2f, w3f, b3f, w4p, b4p, relu_floor)

    return out_padded[:B, :out_dim]


def init_params(key, input_size=3, hidden_size=128, output_size=3):
    """Deterministic synthetic parameters (Linear weights stored as [in, out])."""
    ks = jax.random.split(key, 12)
    h2 = hidden_size // 2
    eps = 1e-5

    def lin(k, fan_in, fan_out):
        bound = 1.0 / jnp.sqrt(fan_in)
        kw, kb = jax.random.split(k)
        w = jax.random.uniform(kw, (fan_in, fan_out), jnp.float32, -bound, bound)
        b = jax.random.uniform(kb, (1, fan_out), jnp.float32, -bound, bound)
        return w, b

    w1, b1 = lin(ks[0], input_size, hidden_size)
    w2, b2 = lin(ks[1], hidden_size, hidden_size)
    w3, b3 = lin(ks[2], hidden_size, h2)
    w4, b4 = lin(ks[3], h2, output_size)

    # BatchNorm1d (eval mode): fold (gamma, beta, running_mean, running_var)
    # into per-feature scale/shift.
    def bn_fold(kg, kb, km, kv, n):
        gamma = 1.0 + 0.1 * jax.random.normal(kg, (1, n), jnp.float32)
        beta = 0.1 * jax.random.normal(kb, (1, n), jnp.float32)
        mean = 0.1 * jax.random.normal(km, (1, n), jnp.float32)
        var = jnp.abs(1.0 + 0.1 * jax.random.normal(kv, (1, n), jnp.float32))
        scale = gamma / jnp.sqrt(var + eps)
        shift = beta - mean * scale
        return scale, shift

    bn1_scale, bn1_shift = bn_fold(ks[4], ks[5], ks[6], ks[7], hidden_size)
    bn2_scale, bn2_shift = bn_fold(ks[8], ks[9], ks[10], ks[11], hidden_size)

    return {
        "w1": w1, "b1": b1, "bn1_scale": bn1_scale, "bn1_shift": bn1_shift,
        "w2": w2, "b2": b2, "bn2_scale": bn2_scale, "bn2_shift": bn2_shift,
        "w3": w3, "b3": b3,
        "w4": w4, "b4": b4,
    }


def _reference(x, p, *, use_bf16=True, bf16_epilogue=False):
    """Pure-JAX reference mirroring the kernel's matmul/epilogue precision."""
    mxu = jnp.bfloat16 if use_bf16 else jnp.float32
    epi = jnp.bfloat16 if (use_bf16 and bf16_epilogue) else jnp.float32

    w1f = (p["w1"] * p["bn1_scale"]).astype(mxu)
    b1f = (p["b1"] * p["bn1_scale"] + p["bn1_shift"]).astype(epi)
    w2f = (p["w2"] * p["bn2_scale"]).astype(mxu)
    b2f = (p["b2"] * p["bn2_scale"] + p["bn2_shift"]).astype(epi)

    def lin_relu(h, w, b):
        acc = jnp.dot(h.astype(w.dtype), w, preferred_element_type=jnp.float32)
        return jnp.maximum(acc.astype(b.dtype) + b, 0)

    h = lin_relu(x.astype(jnp.float32), w1f, b1f)
    h = lin_relu(h, w2f, b2f)
    h = lin_relu(h, p["w3"].astype(mxu), p["b3"].astype(epi))
    out = jnp.dot(h.astype(mxu), p["w4"].astype(mxu),
                  preferred_element_type=jnp.float32) + p["b4"]
    modal = jnp.maximum(out[:, 0], 0.0)
    profit = out[:, 1]
    rugi = jnp.maximum(out[:, 2], 0.0)
    return jnp.stack([modal, profit, rugi], axis=1)


if __name__ == "__main__":
    key = jax.random.PRNGKey(0)
    kx, kp = jax.random.split(key)

    batch = 36                      # exercises batch padding + a 2-step grid
    input_size, hidden_size, output_size = 3, 128, 3

    x = jax.random.normal(kx, (batch, input_size), jnp.float32)
    params = init_params(kp, input_size, hidden_size, output_size)

    bf16_epi = _auto_bf16_epilogue()
    ref = _reference(x, params, use_bf16=True, bf16_epilogue=bf16_epi)

    # Production-style call (large default tile; >= 2 grid steps).
    out = business_constrained_mlp(x, params, bf16_epilogue=bf16_epi)
    out = jax.block_until_ready(out)
    assert out.shape == (batch, output_size)
    max_err = jnp.max(jnp.abs(out - ref))
    assert jnp.allclose(out, ref, atol=1e-2, rtol=1e-2), f"max abs err {max_err}"

    # Small tile so the multi-step pipeline path is also exercised.
    out_small = business_constrained_mlp(x, params, tile_b=8, bf16_epilogue=bf16_epi)
    out_small = jax.block_until_ready(out_small)
    max_err_s = jnp.max(jnp.abs(out_small - ref))
    assert jnp.allclose(out_small, ref, atol=1e-2, rtol=1e-2), f"max abs err {max_err_s}"

    print("KERNEL_OK")
</pallas_src>

<mosaic_0001>
module attributes {stable_mosaic.version = 11 : i64} {
  func.func @_mlp_kernel(%arg0: i32, %arg1: memref<24x3xf32, #tpu.memory_space<vmem>>, %arg2: memref<3x128xbf16, #tpu.memory_space<vmem>>, %arg3: memref<1x128xbf16, #tpu.memory_space<vmem>>, %arg4: memref<128x128xbf16, #tpu.memory_space<vmem>>, %arg5: memref<1x128xbf16, #tpu.memory_space<vmem>>, %arg6: memref<128x64xbf16, #tpu.memory_space<vmem>>, %arg7: memref<1x64xbf16, #tpu.memory_space<vmem>>, %arg8: memref<64x8xbf16, #tpu.memory_space<vmem>>, %arg9: memref<1x8xf32, #tpu.memory_space<vmem>>, %arg10: memref<1x8xf32, #tpu.memory_space<vmem>>, %arg11: memref<24x8xf32, #tpu.memory_space<vmem>>) attributes {dimension_semantics = [#tpu.dimension_semantics<parallel>], iteration_bounds = array<i64: 2>, scalar_prefetch = 0 : i64, scratch_operands = 0 : i64, tpu.core_type = #tpu.core_type<tc>, window_params = [{transform_indices = @transform_0, window_bounds = array<i64: 24, 3>}, {pipeline_mode = #tpu.pipeline_mode<synchronous>, transform_indices = @transform_1, window_bounds = array<i64: 3, 128>}, {pipeline_mode = #tpu.pipeline_mode<synchronous>, transform_indices = @transform_2, window_bounds = array<i64: 1, 128>}, {pipeline_mode = #tpu.pipeline_mode<synchronous>, transform_indices = @transform_3, window_bounds = array<i64: 128, 128>}, {pipeline_mode = #tpu.pipeline_mode<synchronous>, transform_indices = @transform_4, window_bounds = array<i64: 1, 128>}, {pipeline_mode = #tpu.pipeline_mode<synchronous>, transform_indices = @transform_5, window_bounds = array<i64: 128, 64>}, {pipeline_mode = #tpu.pipeline_mode<synchronous>, transform_indices = @transform_6, window_bounds = array<i64: 1, 64>}, {pipeline_mode = #tpu.pipeline_mode<synchronous>, transform_indices = @transform_7, window_bounds = array<i64: 64, 8>}, {pipeline_mode = #tpu.pipeline_mode<synchronous>, transform_indices = @transform_8, window_bounds = array<i64: 1, 8>}, {pipeline_mode = #tpu.pipeline_mode<synchronous>, transform_indices = @transform_9, window_bounds = array<i64: 1, 8>}, {transform_indices = @transform_10, window_bounds = array<i64: 24, 8>}]} {
    %c0 = arith.constant 0 : index
    %c0_0 = arith.constant 0 : index
    %0 = vector.load %arg2[%c0, %c0_0] : memref<3x128xbf16, #tpu.memory_space<vmem>>, vector<3x128xbf16>
    %c0_1 = arith.constant 0 : index
    %c0_2 = arith.constant 0 : index
    %1 = vector.load %arg1[%c0_1, %c0_2] : memref<24x3xf32, #tpu.memory_space<vmem>>, vector<24x3xf32>
    %2 = arith.truncf %1 : vector<24x3xf32> to vector<24x3xbf16>
    %cst = arith.constant dense<0.000000e+00> : vector<24x128xf32>
    %3 = tpu.matmul %2, %0, %cst {dimension_numbers = #tpu.dot_dimension_numbers<[1], [0], [0], [1], [0, 0, 1, 1], [], []>} : vector<24x3xbf16>, vector<3x128xbf16>, vector<24x128xf32> -> vector<24x128xf32>
    %4 = arith.truncf %3 : vector<24x128xf32> to vector<24x128xbf16>
    %c0_3 = arith.constant 0 : index
    %c0_4 = arith.constant 0 : index
    %5 = vector.load %arg3[%c0_3, %c0_4] : memref<1x128xbf16, #tpu.memory_space<vmem>>, vector<1x128xbf16>
    %6 = vector.broadcast %5 : vector<1x128xbf16> to vector<24x128xbf16>
    %7 = arith.addf %4, %6 : vector<24x128xbf16>
    %cst_5 = arith.constant 0.000000e+00 : bf16
    %8 = vector.broadcast %cst_5 : bf16 to vector<24x128xbf16>
    %9 = arith.maximumf %7, %8 : vector<24x128xbf16>
    %c0_6 = arith.constant 0 : index
    %c0_7 = arith.constant 0 : index
    %10 = vector.load %arg4[%c0_6, %c0_7] : memref<128x128xbf16, #tpu.memory_space<vmem>>, vector<128x128xbf16>
    %cst_8 = arith.constant dense<0.000000e+00> : vector<24x128xf32>
    %11 = tpu.matmul %9, %10, %cst_8 {dimension_numbers = #tpu.dot_dimension_numbers<[1], [0], [0], [1], [0, 0, 1, 1], [], []>} : vector<24x128xbf16>, vector<128x128xbf16>, vector<24x128xf32> -> vector<24x128xf32>
    %12 = arith.truncf %11 : vector<24x128xf32> to vector<24x128xbf16>
    %c0_9 = arith.constant 0 : index
    %c0_10 = arith.constant 0 : index
    %13 = vector.load %arg5[%c0_9, %c0_10] : memref<1x128xbf16, #tpu.memory_space<vmem>>, vector<1x128xbf16>
    %14 = vector.broadcast %13 : vector<1x128xbf16> to vector<24x128xbf16>
    %15 = arith.addf %12, %14 : vector<24x128xbf16>
    %cst_11 = arith.constant 0.000000e+00 : bf16
    %16 = vector.broadcast %cst_11 : bf16 to vector<24x128xbf16>
    %17 = arith.maximumf %15, %16 : vector<24x128xbf16>
    %c0_12 = arith.constant 0 : index
    %c0_13 = arith.constant 0 : index
    %18 = vector.load %arg6[%c0_12, %c0_13] : memref<128x64xbf16, #tpu.memory_space<vmem>>, vector<128x64xbf16>
    %cst_14 = arith.constant dense<0.000000e+00> : vector<24x64xf32>
    %19 = tpu.matmul %17, %18, %cst_14 {dimension_numbers = #tpu.dot_dimension_numbers<[1], [0], [0], [1], [0, 0, 1, 1], [], []>} : vector<24x128xbf16>, vector<128x64xbf16>, vector<24x64xf32> -> vector<24x64xf32>
    %20 = arith.truncf %19 : vector<24x64xf32> to vector<24x64xbf16>
    %c0_15 = arith.constant 0 : index
    %c0_16 = arith.constant 0 : index
    %21 = vector.load %arg7[%c0_15, %c0_16] : memref<1x64xbf16, #tpu.memory_space<vmem>>, vector<1x64xbf16>
    %22 = vector.broadcast %21 : vector<1x64xbf16> to vector<24x64xbf16>
    %23 = arith.addf %20, %22 : vector<24x64xbf16>
    %cst_17 = arith.constant 0.000000e+00 : bf16
    %24 = vector.broadcast %cst_17 : bf16 to vector<24x64xbf16>
    %25 = arith.maximumf %23, %24 : vector<24x64xbf16>
    %c0_18 = arith.constant 0 : index
    %c0_19 = arith.constant 0 : index
    %26 = vector.load %arg8[%c0_18, %c0_19] : memref<64x8xbf16, #tpu.memory_space<vmem>>, vector<64x8xbf16>
    %cst_20 = arith.constant dense<0.000000e+00> : vector<24x8xf32>
    %27 = tpu.matmul %25, %26, %cst_20 {dimension_numbers = #tpu.dot_dimension_numbers<[1], [0], [0], [1], [0, 0, 1, 1], [], []>} : vector<24x64xbf16>, vector<64x8xbf16>, vector<24x8xf32> -> vector<24x8xf32>
    %c0_21 = arith.constant 0 : index
    %c0_22 = arith.constant 0 : index
    %28 = vector.load %arg9[%c0_21, %c0_22] : memref<1x8xf32, #tpu.memory_space<vmem>>, vector<1x8xf32>
    %29 = vector.broadcast %28 : vector<1x8xf32> to vector<24x8xf32>
    %30 = arith.addf %27, %29 : vector<24x8xf32>
    %c0_23 = arith.constant 0 : index
    %c0_24 = arith.constant 0 : index
    %31 = vector.load %arg10[%c0_23, %c0_24] : memref<1x8xf32, #tpu.memory_space<vmem>>, vector<1x8xf32>
    %32 = vector.broadcast %31 : vector<1x8xf32> to vector<24x8xf32>
    %33 = arith.maximumf %30, %32 : vector<24x8xf32>
    %c0_25 = arith.constant 0 : index
    %c0_26 = arith.constant 0 : index
    %34 = vector.load %arg11[%c0_25, %c0_26] : memref<24x8xf32, #tpu.memory_space<vmem>>, vector<24x8xf32>
    tpu.vector_store %arg11[%c0_25, %c0_26], %33 {strides = array<i32>} : memref<24x8xf32, #tpu.memory_space<vmem>>, vector<24x8xf32>,
    return
  }
  func.func @transform_0(%arg0: i32) -> (i32, i32) {
    %c0_i32 = arith.constant 0 : i32
    %c0_i32_0 = arith.constant 0 : i32
    return %arg0, %c0_i32 : i32, i32
  }
  func.func @transform_1(%arg0: i32) -> (i32, i32) {
    %c0_i32 = arith.constant 0 : i32
    %c0_i32_0 = arith.constant 0 : i32
    %c0_i32_1 = arith.constant 0 : i32
    return %c0_i32, %c0_i32_0 : i32, i32
  }
  func.func @transform_2(%arg0: i32) -> (i32, i32) {
    %c0_i32 = arith.constant 0 : i32
    %c0_i32_0 = arith.constant 0 : i32
    %c0_i32_1 = arith.constant 0 : i32
    return %c0_i32, %c0_i32_0 : i32, i32
  }
  func.func @transform_3(%arg0: i32) -> (i32, i32) {
    %c0_i32 = arith.constant 0 : i32
    %c0_i32_0 = arith.constant 0 : i32
    %c0_i32_1 = arith.constant 0 : i32
    return %c0_i32, %c0_i32_0 : i32, i32
  }
  func.func @transform_4(%arg0: i32) -> (i32, i32) {
    %c0_i32 = arith.constant 0 : i32
    %c0_i32_0 = arith.constant 0 : i32
    %c0_i32_1 = arith.constant 0 : i32
    return %c0_i32, %c0_i32_0 : i32, i32
  }
  func.func @transform_5(%arg0: i32) -> (i32, i32) {
    %c0_i32 = arith.constant 0 : i32
    %c0_i32_0 = arith.constant 0 : i32
    %c0_i32_1 = arith.constant 0 : i32
    return %c0_i32, %c0_i32_0 : i32, i32
  }
  func.func @transform_6(%arg0: i32) -> (i32, i32) {
    %c0_i32 = arith.constant 0 : i32
    %c0_i32_0 = arith.constant 0 : i32
    %c0_i32_1 = arith.constant 0 : i32
    return %c0_i32, %c0_i32_0 : i32, i32
  }
  func.func @transform_7(%arg0: i32) -> (i32, i32) {
    %c0_i32 = arith.constant 0 : i32
    %c0_i32_0 = arith.constant 0 : i32
    %c0_i32_1 = arith.constant 0 : i32
    return %c0_i32, %c0_i32_0 : i32, i32
  }
  func.func @transform_8(%arg0: i32) -> (i32, i32) {
    %c0_i32 = arith.constant 0 : i32
    %c0_i32_0 = arith.constant 0 : i32
    %c0_i32_1 = arith.constant 0 : i32
    return %c0_i32, %c0_i32_0 : i32, i32
  }
  func.func @transform_9(%arg0: i32) -> (i32, i32) {
    %c0_i32 = arith.constant 0 : i32
    %c0_i32_0 = arith.constant 0 : i32
    %c0_i32_1 = arith.constant 0 : i32
    return %c0_i32, %c0_i32_0 : i32, i32
  }
  func.func @transform_10(%arg0: i32) -> (i32, i32) {
    %c0_i32 = arith.constant 0 : i32
    %c0_i32_0 = arith.constant 0 : i32
    return %arg0, %c0_i32 : i32, i32
  }
}

</mosaic_0001>

<bundles_post_ra>
// kernel: tpu_custom_call.1
= control target key start
LH: loop header
LB: loop body
LE: loop exit
PB: predicated region body
PF: predicated region fallthrough
CT: control target
= control target key end

     0   :  { %s1079_s13 = smov 0   ;;  %s1181_s0 = inlined_call_operand.vmem [shape: f32[48,3], index: 0, kind: input, shape index: {}]   ;;  %s1182_s1 = inlined_call_operand.vmem [shape: bf16[3,128], index: 1, kind: input, shape index: {}]   ;;  %s1183_s2 = inlined_call_operand.vmem [shape: bf16[1,128], index: 2, kind: input, shape index: {}]   ;;  %s1184_s3 = inlined_call_operand.vmem [shape: bf16[128,128], index: 3, kind: input, shape index: {}]   ;;  %s1185_s4 = inlined_call_operand.vmem [shape: bf16[1,128], index: 4, kind: input, shape index: {}]   ;;  %s1186_s5 = inlined_call_operand.vmem [shape: bf16[128,64], index: 5, kind: input, shape index: {}]   ;;  %s1187_s6 = inlined_call_operand.vmem [shape: bf16[1,64], index: 6, kind: input, shape index: {}]   ;;  %s1188_s7 = inlined_call_operand.vmem [shape: bf16[64,8], index: 7, kind: input, shape index: {}]   ;;  %s1189_s8 = inlined_call_operand.vmem [shape: f32[1,8], index: 8, kind: input, shape index: {}]   ;;  %s1190_s9 = inlined_call_operand.vmem [shape: f32[1,8], index: 9, kind: input, shape index: {}]   ;;  %s1191_s10 = inlined_call_operand.vmem [shape: f32[48,8], index: 10, kind: output, shape index: {}]  }
   0x1 LB: > { %s862_s14 = sadd.s32 4294967295, %s1020_s13   ;;  %p866_p0 = scmp.ge.s32.totalorder %s1020_s13, 1  ;;  %s1020_s13 = sphi %s1079_s13, %s20_s13  }
   0x2   : > { %p313_p1 = scmp.lt.s32.totalorder %s1020_s13, 3 }
   0x4   : > { %p314_p2 = pnand %p866_p0, %p313_p1 }
   0x5   : > { %s351_s17 = smul.u32 (!%p314_p2), 3, %s862_s14 }
   0x6   : > { %317 = sbr.rel (%p314_p2) target bundleno = 842 (0x34a), region = 60 }
   0x7   : > { %p352_p3 = scmp.lt.s32.totalorder (!%p314_p2), %s351_s17, 5 }
   0xb   : > { %v364_v0 = vld [vmem:[%s1182_s1] sm:$0x3]  ;;  %vm377_vm0 = vcmask 1040384   ;;  %vm378_vm1 = vcmask 1041408   ;;  %v1022_v1 = vmov 65535   ;;  %v994_v4 = vld [vmem:[%s1184_s3 + $0x38] sm:$0xff]   ;;  %v438_v23 = vlaneseq }
   0xc   : > { %v379_v2 = vsel %vm377_vm0, 4294967295, %v1022_v1  ;;  %v995_v5 = vld [vmem:[%s1184_s3 + $0x30] sm:$0xff]   ;;  %s1193_s17 = smov (!%p352_p3, %s351_s17), 5  ;;  %932 = vmatprep.subr.bf16.mxu1 %v994_v4  ;;  %v996_v7 = vld [vmem:[%s1184_s3 + $0x28] sm:$0xff]   ;;  %vm370_vm2 = vcmask 23552   ;;  %v997_v11 = vld [vmem:[%s1184_s3 + $0x20] sm:$0xff]  }
   0xd   : > { %v380_v3 = vsel %vm378_vm1, %v379_v2, 0  ;;  %933 = vmatpush3.bf16.msra.mxu1 %v994_v4  ;;  %s867_s22 = sshll.u32 %s1193_s17, 3  ;;  %v998_v14 = vld [vmem:[%s1184_s3 + $0x18] sm:$0xff]   ;;  %v999_v15 = vld [vmem:[%s1184_s3 + $0x10] sm:$0xff]   ;;  %v1000_v16 = vld [vmem:[%s1184_s3 + $0x8] sm:$0xff]   ;;  %v439_v24 = vshrl.u32 %v438_v23, 7 }
   0xe   : > { %v382_v6 = vand.u32 %v380_v3, %v364_v0  ;;  %934 = vmatprep.subr.bf16.mxu1 %v995_v5  ;;  %s355_s27 = scalar_lea.vmem %s1181_s0, %s867_s22  ;;  %v1001_v17 = vld [vmem:[%s1184_s3] sm:$0xff]   ;;  %v1002_v18 = vld [vmem:[%s1186_s5 + $0x38] sm:$0xff]   ;;  %v1003_v19 = vld [vmem:[%s1186_s5 + $0x30] sm:$0xff]   ;;  %v1023_v37 = vmov 0   ;;  %vm737_vm3 = vcmask 523264   ;;  %s361_s23 = scalar_lea.vmem %s1191_s10, %s867_s22  ;;  %vm802_vm4 = vcmask 64512  }
   0xf   : > { %v365_v8 = vld [vmem:[%s355_s27] sm:$0xff]  ;;  %v366_v9 = vld [vmem:[%s355_s27 + $0x8] sm:$0xff]  ;;  %v367_v10 = vld [vmem:[%s355_s27 + $0x10] sm:$0xff]  ;;  %v440_v28 = vsub.s32 0, %v439_v24 }
  0x10   : > { %926 = vmatprep.subr.bf16.mxu0 %v382_v6  ;;  %v368_v12 = vpack.c.bf16 %v366_v9, %v365_v8  ;;  %v369_v13 = vpack.c.bf16 %v367_v10, %v367_v10  ;;  %v1004_v20 = vld [vmem:[%s1186_s5 + $0x28] sm:$0xff]   ;;  %v1005_v21 = vld [vmem:[%s1186_s5 + $0x20] sm:$0xff]   ;;  %v1006_v22 = vld [vmem:[%s1186_s5 + $0x18] sm:$0xff]  }
  0x11   : > { %927 = vmatpush3.bf16.msra.mxu0 %v382_v6  ;;  %935 = vmatpush3.bf16.msra.mxu1 %v995_v5  ;;  %v434_v25 = vld [vmem:[%s1183_s2] sm:$0x1]  ;;  %v1007_v40 = vld [vmem:[%s1186_s5 + $0x10] sm:$0xff]   ;;  %v1008_v41 = vld [vmem:[%s1186_s5 + $0x8] sm:$0xff]  }
  0x12   : > { %936 = vmatprep.subr.bf16.mxu1 %v996_v7  ;;  %928 = vmatprep.mubr.msk.bf16.mxu0 %vm370_vm2, %v368_v12  ;;  %v436_v27 = vpack.i.b16 %v434_v25, %v434_v25  ;;  %v1009_v42 = vld [vmem:[%s1186_s5] sm:$0xff]   ;;  %v1010_v43 = vld [vmem:[%s1188_s7 + $0x18] sm:$0xff]   ;;  %v1011_v57 = vld [vmem:[%s1188_s7 + $0x10] sm:$0xff]  }
  0x13   : > { %952 = vmatprep.subr.bf16.mxu0 %v1002_v18  ;;  %v560_v44 = vld [vmem:[%s1185_s4] sm:$0x1]  ;;  %v1012_v58 = vld [vmem:[%s1188_s7 + $0x8] sm:$0xff]  }
  0x14   : > { %929 = vmatmul.mubr.msk.bf16.vlgmr.msra.gmra.mxu0 %vm370_vm2, %v369_v13  ;;  %v441_v31 = vrot.slane %v436_v27, %v440_v28  ;;  %v562_v46 = vpack.i.b16 %v560_v44, %v560_v44  ;;  %v1013_v59 = vld [vmem:[%s1188_s7] sm:$0xff]  }
  0x15   : > { %937 = vmatpush3.bf16.msra.mxu1 %v996_v7  ;;  %953 = vmatpush3.bf16.msra.mxu0 %v1002_v18  ;;  %v686_v60 = vld [vmem:[%s1187_s6] sm:$0x1] }
  0x16   : > { %938 = vmatprep.subr.bf16.mxu1 %v997_v11  ;;  %954 = vmatprep.subr.bf16.mxu0 %v1003_v19  ;;  %v567_v49 = vrot.slane %v562_v46, %v440_v28  ;;  %v688_v62 = vpack.i.b16 %v686_v60, %v686_v60  ;;  %v887_v9 = vld [vmem:[%s1189_s8] ss:$0 sm:$0xff] }
  0x18   : > { %v693_v1 = vrot.slane %v688_v62, %v440_v28 }
  0x19   : > { %939 = vmatpush3.bf16.msra.mxu1 %v997_v11  ;;  %955 = vmatpush3.bf16.msra.mxu0 %v1003_v19  ;;  %v894_v11 = vld [vmem:[%s1190_s9] ss:$0 sm:$0xff] }
  0x1a   : > { %940 = vmatprep.subr.bf16.mxu1 %v998_v14  ;;  %956 = vmatprep.subr.bf16.mxu0 %v1004_v20 }
  0x1d   : > { %941 = vmatpush3.bf16.msra.mxu1 %v998_v14  ;;  %957 = vmatpush3.bf16.msra.mxu0 %v1004_v20 }
  0x1e   : > { %942 = vmatprep.subr.bf16.mxu1 %v999_v15  ;;  %958 = vmatprep.subr.bf16.mxu0 %v1005_v21 }
  0x21   : > { %943 = vmatpush3.bf16.msra.mxu1 %v999_v15  ;;  %959 = vmatpush3.bf16.msra.mxu0 %v1005_v21 }
  0x22   : > { %944 = vmatprep.subr.bf16.mxu1 %v1000_v16  ;;  %960 = vmatprep.subr.bf16.mxu0 %v1006_v22 }
  0x25   : > { %945 = vmatpush3.bf16.msra.mxu1 %v1000_v16  ;;  %961 = vmatpush3.bf16.msra.mxu0 %v1006_v22 }
  0x26   : > { %946 = vmatprep.subr.bf16.mxu1 %v1001_v17  ;;  %962 = vmatprep.subr.bf16.mxu0 %v1007_v40 }
  0x29   : > { %947 = vmatpush3.bf16.msra.mxu1 %v1001_v17  ;;  %963 = vmatpush3.bf16.msra.mxu0 %v1007_v40 }
  0x2a   : > { %964 = vmatprep.subr.bf16.mxu0 %v1008_v41  ;;  %972 = vmatprep.subr.bf16.mxu1 %v1010_v43 }
  0x2d   : > { %965 = vmatpush3.bf16.msra.mxu0 %v1008_v41 }
  0x2e   : > { %966 = vmatprep.subr.bf16.mxu0 %v1009_v42 }
  0x31   : > { %967 = vmatpush3.bf16.msra.mxu0 %v1009_v42 }
  0xd4   : > { %v930_v26 = vpop.f32.mrf.mxu0 }
  0xd5   : > { %v433_v30 = vpack.c.bf16 %v930_v26, %v930_v26 }
  0xd6   : > { %v418_v29 = vpop.f32.mrf.mxu0 }
  0xd7   : > { %v443_v35 = vadd.bf16 %v441_v31, %v433_v30 }
  0xd8   : > { %v931_v32 = vpop.f32.mrf.mxu0 }
  0xd9   : > { %v445_v39 = vmax.bf16 %v1023_v37, %v443_v35 }
  0xda   : > { %v421_v33 = vpop.f32.mrf.mxu0 }
  0xdb   : > { %v432_v34 = vpack.c.bf16 %v421_v33, %v418_v29 }
  0xdd   : > { %v442_v36 = vadd.bf16 %v441_v31, %v432_v34 }
  0xdf   : > { %v444_v38 = vmax.bf16 %v1023_v37, %v442_v36 }
  0xe1   : > { %948 = vmatprep.mubr.bf16.mxu1 %v444_v38 }
  0xe2   : > { %949 = vmatmul.mubr.bf16.vlgmr.msra.gmra.mxu1 %v445_v39 }
  0xe3   : > { %973 = vmatpush3.bf16.msra.mxu1 %v1010_v43 }
  0xe4   : > { %974 = vmatprep.subr.bf16.mxu1 %v1011_v57 }
  0xe7   : > { %975 = vmatpush3.bf16.msra.mxu1 %v1011_v57 }
  0xe8   : > { %976 = vmatprep.subr.bf16.mxu1 %v1012_v58 }
  0xeb   : > { %977 = vmatpush3.bf16.msra.mxu1 %v1012_v58 }
  0xec   : > { %978 = vmatprep.subr.bf16.mxu1 %v1013_v59 }
  0xef   : > { %979 = vmatpush3.bf16.msra.mxu1 %v1013_v59 }
 0x1a2   : > { %v950_v45 = vpop.f32.mrf.mxu1 }
 0x1a3   : > { %v559_v48 = vpack.c.bf16 %v950_v45, %v950_v45 }
 0x1a4   : > { %v544_v47 = vpop.f32.mrf.mxu1 }
 0x1a5   : > { %v569_v53 = vadd.bf16 %v567_v49, %v559_v48 }
 0x1a6   : > { %v951_v50 = vpop.f32.mrf.mxu1 }
 0x1a7   : > { %v571_v56 = vmax.bf16 %v1023_v37, %v569_v53 }
 0x1a8   : > { %v547_v51 = vpop.f32.mrf.mxu1 }
 0x1a9   : > { %v558_v52 = vpack.c.bf16 %v547_v51, %v544_v47 }
 0x1ab   : > { %v568_v54 = vadd.bf16 %v567_v49, %v558_v52 }
 0x1ad   : > { %v570_v55 = vmax.bf16 %v1023_v37, %v568_v54 }
 0x1af   : > { %968 = vmatprep.mubr.bf16.mxu0 %v570_v55 }
 0x1b0   : > { %969 = vmatmul.mubr.bf16.vlgmr.msra.gmra.mxu0 %v571_v56 }
 0x270   : > { %v970_v61 = vpop.f32.mrf.mxu0 }
 0x271   : > { %v685_v0 = vpack.c.bf16 %v970_v61, %v970_v61 }
 0x272   : > { %v670_v63 = vpop.f32.mrf.mxu0 }
 0x273   : > { %v695_v5 = vadd.bf16 %v693_v1, %v685_v0 }
 0x274   : > { %v971_v2 = vpop.f32.mrf.mxu0 }
 0x275   : > { %v697_v8 = vmax.bf16 %v1023_v37, %v695_v5 }
 0x276   : > { %v673_v3 = vpop.f32.mrf.mxu0 }
 0x277   : > { %v684_v4 = vpack.c.bf16 %v673_v3, %v670_v63 }
 0x279   : > { %v694_v6 = vadd.bf16 %v693_v1, %v684_v4 }
 0x27b   : > { %v696_v7 = vmax.bf16 %v1023_v37, %v694_v6 }
 0x27d   : > { %980 = vmatprep.mubr.msk.bf16.mxu1 %vm737_vm3, %v696_v7 }
 0x27e   : > { %981 = vmatmul.mubr.msk.bf16.vlgmr.msra.gmra.mxu1 %vm737_vm3, %v697_v8 }
 0x33e   : > { %v982_v10 = vpop.f32.mrf.mxu1 }
 0x33f   : > { %v787_v12 = vadd.f32 %v982_v10, %v887_v9 }
 0x340   : > { %v778_v13 = vpop.f32.mrf.mxu1 }
 0x341   : > { %v801_v14 = vmax.f32 %v787_v12, %v894_v11  ;;  %v779_v15 = vadd.f32 %v887_v9, %v778_v13 }
 0x342   : > { %v983_v16 = vpop.f32.mrf.mxu1 }
 0x343   : > { %805 = vst.msk [vmem:[%s361_s23 + $0x10] sm:$0xff] %vm802_vm4, %v801_v14  ;;  %v799_v17 = vmax.f32 %v779_v15, %v894_v11 }
 0x344   : > { %v781_v18 = vpop.f32.mrf.mxu1 }
 0x345   : > { %803 = vst.msk [vmem:[%s361_s23] sm:$0xff] %vm802_vm4, %v799_v17  ;;  %v782_v19 = vadd.f32 %v887_v9, %v781_v18 }
 0x347   : > { %v800_v20 = vmax.f32 %v782_v19, %v894_v11 }
 0x349   : > { %804 = vst.msk [vmem:[%s361_s23 + $0x8] sm:$0xff] %vm802_vm4, %v800_v20 }
 0x34a PF: > { %s20_s13 = sadd.s32 1, %s1020_s13  }
 0x34b   : > { %p17_p4 = scmp.ge.s32.totalorder %s20_s13, 4  }
 0x34d   :  { %19 = sbr.rel (!%p17_p4) target bundleno = 1 (0x1), region = 90 }

</bundles_post_ra>
